<compile_context>
chip_gen: v5e
topology: v5e:2x2
jax: 0.10.0
libtpu: 0.0.40
codegen_flags: <defaults>
</compile_context>

<pallas_src>
import functools

import jax
import jax.numpy as jnp
from jax.experimental import pallas as pl
from jax.experimental.pallas import tpu as pltpu


HIDDEN = 128
OUTPUT = 128
LN_EPS = 1e-5       # torch.nn.LayerNorm default
_LANE = 128


def _round_up(n, m):
    return ((n + m - 1) // m) * m


def _choose_tile(E, tile_e, min_steps=4):
    """Large row tile, but keep >=min_steps grid steps when E allows it."""
    tile = min(int(tile_e), _round_up(E, 8))
    if E >= min_steps * 8:
        tile = min(tile, _round_up(pl.cdiv(E, min_steps), 8))
    return max(8, tile)


def _vmem_limit_bytes(tile, n_feats, k_pad, out_bytes):
    """VMEM budget from the real buffers (narrow blocks are lane-padded)."""
    feats = n_feats * tile * _LANE * 4 * 2          # f32 features, 2 buffers
    out = tile * _LANE * out_bytes * 2              # output, 2 buffers
    scratch = tile * max(k_pad, _LANE) * 2          # bf16 concat scratch
    weights = 2 * 2 * (k_pad * HIDDEN + HIDDEN * HIDDEN + HIDDEN * OUTPUT)
    vectors = 2 * 4 * 6 * _LANE                     # biases / gamma / beta
    interm = 4 * tile * _LANE * 4                   # f32/bf16 activations
    est = feats + out + scratch + weights + vectors + interm
    # >= 32 MiB lifts v5e's 16 MiB scoped default; <= 48 MiB stays safely
    # under v7x's 64 MiB physical VMEM.
    return int(min(48 << 20, max(32 << 20, (est * 3) // 2)))


def _edge_mlp_kernel(*refs, feat_dims):
    n = len(feat_dims)
    feat_refs = refs[:n]
    (w1_ref, b1_ref, w2_ref, b2_ref, w3_ref, b3_ref,
     gamma_ref, beta_ref, o_ref, x_ref) = refs[n:]

    # Zero the concat scratch once; the padded K columns then stay zero for
    # every grid step (scratch persists), so the zero W1 rows see clean zeros
    # instead of uninitialized VMEM.
    @pl.when(pl.program_id(0) == 0)
    def _():
        x_ref[...] = jnp.zeros_like(x_ref)

    # Fused concat: write each feature chunk (cast to bf16) into its column
    # slice of the scratch -> a single dense-K matmul for layer 1.
    off = 0
    for f_ref, d in zip(feat_refs, feat_dims):
        x_ref[:, off:off + d] = f_ref[...].astype(jnp.bfloat16)
        off += d

    # ---- Linear 1 + ReLU (bf16 operands, f32 accumulation) ----
    h = jnp.dot(x_ref[...], w1_ref[...], preferred_element_type=jnp.float32)
    h = jnp.maximum(h + b1_ref[...], 0.0).astype(jnp.bfloat16)

    # ---- Linear 2 + ReLU ----
    h = jnp.dot(h, w2_ref[...], preferred_element_type=jnp.float32)
    h = jnp.maximum(h + b2_ref[...], 0.0).astype(jnp.bfloat16)

    # ---- Linear 3 ----
    y = jnp.dot(h, w3_ref[...], preferred_element_type=jnp.float32) + b3_ref[...]

    # ---- LayerNorm (two-pass variance, matches torch numerics) ----
    mean = jnp.mean(y, axis=-1, keepdims=True)
    c = y - mean
    var = jnp.mean(c * c, axis=-1, keepdims=True)
    y_norm = c * jax.lax.rsqrt(var + LN_EPS)
    o_ref[...] = (y_norm * gamma_ref[...] + beta_ref[...]).astype(o_ref.dtype)


def pack_params(params, feat_dims):
    """One-time (outside the per-call path) bf16 packing of the weights.

    W1 is zero-padded along its row (K) dimension to a multiple of 64 so the
    in-kernel concat scratch feeds a single dense-K matmul.
    """
    w1, b1, w2, b2, w3, b3, gamma, beta = params
    input_size = sum(feat_dims)
    assert w1.shape[0] == input_size, "W1 rows must match concat feature size"
    k_pad = _round_up(max(input_size, 8), 64)
    w1p = jnp.zeros((k_pad, w1.shape[1]), jnp.bfloat16)
    w1p = w1p.at[:input_size, :].set(w1.astype(jnp.bfloat16))
    return (w1p,
            b1.astype(jnp.float32),
            w2.astype(jnp.bfloat16),
            b2.astype(jnp.float32),
            w3.astype(jnp.bfloat16),
            b3.astype(jnp.float32),
            gamma.astype(jnp.float32),
            beta.astype(jnp.float32))


@functools.partial(jax.jit, static_argnames=("tile_e", "out_dtype"))
def edge_model_forward(src, dest, edge_attr, packed_params,
                       tile_e=2048, out_dtype=None):
    """EdgeModel.forward: (fused) concat + 3-layer MLP + LayerNorm."""
    feats = [src, dest] if edge_attr is None else [src, dest, edge_attr]
    w1p, b1, w2b, b2, w3b, b3, gamma, beta = packed_params

    E = src.shape[0]
    feat_dims = tuple(f.shape[1] for f in feats)
    input_size = sum(feat_dims)
    k_pad = w1p.shape[0]
    assert k_pad >= input_size, "packed W1 must cover the concat feature size"

    out_dtype = src.dtype if out_dtype is None else jnp.dtype(out_dtype)
    out_bytes = jnp.dtype(out_dtype).itemsize

    tile = _choose_tile(E, tile_e)
    grid = (pl.cdiv(E, tile),)

    row_map = lambda e: (e, 0)
    full_map = lambda e: (0, 0)

    in_specs = (
        [pl.BlockSpec((tile, d), row_map) for d in feat_dims] +       # features
        [pl.BlockSpec((k_pad, HIDDEN), full_map),                     # W1 (padded)
         pl.BlockSpec((1, HIDDEN), full_map),                         # b1
         pl.BlockSpec((HIDDEN, HIDDEN), full_map),                    # W2
         pl.BlockSpec((1, HIDDEN), full_map),                         # b2
         pl.BlockSpec((HIDDEN, OUTPUT), full_map),                    # W3
         pl.BlockSpec((1, OUTPUT), full_map),                         # b3
         pl.BlockSpec((1, OUTPUT), full_map),                         # gamma
         pl.BlockSpec((1, OUTPUT), full_map)])                        # beta

    flops = (2 * E * (k_pad * HIDDEN + HIDDEN * HIDDEN + HIDDEN * OUTPUT)
             + 10 * E * OUTPUT)
    bytes_accessed = (E * (input_size * 4 + OUTPUT * out_bytes)
                      + 2 * (k_pad * HIDDEN + HIDDEN * HIDDEN + HIDDEN * OUTPUT)
                      + 6 * OUTPUT * 4)
    cost = pl.CostEstimate(flops=flops, transcendentals=E,
                           bytes_accessed=bytes_accessed)

    kernel = functools.partial(_edge_mlp_kernel, feat_dims=feat_dims)

    out = pl.pallas_call(
        kernel,
        out_shape=jax.ShapeDtypeStruct((E, OUTPUT), out_dtype),
        grid_spec=pltpu.PrefetchScalarGridSpec(
            num_scalar_prefetch=0,
            grid=grid,
            in_specs=in_specs,
            out_specs=pl.BlockSpec((tile, OUTPUT), row_map),
            scratch_shapes=[pltpu.VMEM((tile, k_pad), jnp.bfloat16)],
        ),
        compiler_params=pltpu.CompilerParams(
            dimension_semantics=("parallel",),
            vmem_limit_bytes=_vmem_limit_bytes(tile, len(feat_dims),
                                               k_pad, out_bytes)),
        cost_estimate=cost,
    )(*feats, w1p, b1, w2b, b2, w3b, b3, gamma, beta)
    return out


def init_params(key, input_size, hidden_size=HIDDEN, output_size=OUTPUT,
                dtype=jnp.float32):
    """Deterministic synthetic parameters matching make_mlp() shapes."""
    k1, k2, k3, k4, k5, k6 = jax.random.split(key, 6)

    def linear(kw, kb, fan_in, fan_out):
        bound = 1.0 / jnp.sqrt(fan_in)
        w = jax.random.uniform(kw, (fan_in, fan_out), dtype, -bound, bound)
        b = jax.random.uniform(kb, (1, fan_out), dtype, -bound, bound)
        return w, b

    w1, b1 = linear(k1, k2, input_size, hidden_size)
    w2, b2 = linear(k3, k4, hidden_size, hidden_size)
    w3, b3 = linear(k5, k6, hidden_size, output_size)
    gamma = jnp.ones((1, output_size), dtype)
    beta = jnp.zeros((1, output_size), dtype)
    return (w1, b1, w2, b2, w3, b3, gamma, beta)


def _layernorm(y, gamma, beta):
    mean = jnp.mean(y, axis=-1, keepdims=True)
    var = jnp.mean((y - mean) ** 2, axis=-1, keepdims=True)
    return (y - mean) / jnp.sqrt(var + LN_EPS) * gamma + beta


def reference_forward_f32(src, dest, edge_attr, params):
    """Full-precision reference (matches the PyTorch module in f32)."""
    w1, b1, w2, b2, w3, b3, gamma, beta = params
    x = jnp.concatenate([src, dest, edge_attr], axis=1)
    h = jnp.maximum(x @ w1 + b1, 0.0)
    h = jnp.maximum(h @ w2 + b2, 0.0)
    y = h @ w3 + b3
    return _layernorm(y, gamma, beta)


def reference_forward_bf16(src, dest, edge_attr, params):
    """Reference using the kernel's matmul dtype policy (bf16 in / f32 acc)."""
    w1, b1, w2, b2, w3, b3, gamma, beta = params
    x = jnp.concatenate([src, dest, edge_attr], axis=1)

    def mm(a, w):
        return jnp.dot(a.astype(jnp.bfloat16), w.astype(jnp.bfloat16),
                       preferred_element_type=jnp.float32)

    h = jnp.maximum(mm(x, w1) + b1, 0.0)
    h = jnp.maximum(mm(h, w2) + b2, 0.0)
    y = mm(h, w3) + b3
    return _layernorm(y, gamma, beta)


if __name__ == "__main__":
    key = jax.random.PRNGKey(0)
    k_src, k_dst, k_edge, k_param = jax.random.split(key, 4)

    E = 70          # number of edges (small demo size; exercises partial tile)
    NODE_F = 16     # per-node feature dim
    EDGE_F = 8      # per-edge attribute dim
    INPUT_SIZE = 2 * NODE_F + EDGE_F   # = 40

    src = jax.random.normal(k_src, (E, NODE_F), jnp.float32)
    dest = jax.random.normal(k_dst, (E, NODE_F), jnp.float32)
    edge_attr = jax.random.normal(k_edge, (E, EDGE_F), jnp.float32)

    params = init_params(k_param, INPUT_SIZE)
    packed = pack_params(params, (NODE_F, NODE_F, EDGE_F))   # one-time bf16 pack

    out = edge_model_forward(src, dest, edge_attr, packed)
    out = jax.block_until_ready(out)
    assert out.shape == (E, OUTPUT)

    # Tight check against a reference with the same bf16-matmul policy.
    ref_bf16 = reference_forward_bf16(src, dest, edge_attr, params)
    assert jnp.allclose(out, ref_bf16, atol=2e-3, rtol=2e-3), \
        "mismatch vs bf16-matmul reference"

    # Loose sanity check against the full-f32 PyTorch-equivalent reference
    # (bf16 matmul inputs cost a few 1e-3 of absolute error post-LayerNorm).
    ref_f32 = reference_forward_f32(src, dest, edge_attr, params)
    assert jnp.allclose(out, ref_f32, atol=5e-2, rtol=5e-2), \
        "mismatch vs f32 reference"
    assert not bool(jnp.any(jnp.isnan(out)))

    # Optional bf16-output path (halves output HBM traffic on v6e/v7x).
    out_bf16 = jax.block_until_ready(
        edge_model_forward(src, dest, edge_attr, packed,
                           out_dtype=jnp.bfloat16))
    assert out_bf16.dtype == jnp.bfloat16
    assert jnp.allclose(out_bf16.astype(jnp.float32), ref_bf16,
                        atol=2e-2, rtol=2e-2), "mismatch for bf16 output path"

    print("KERNEL_OK")
</pallas_src>

<mosaic_0001>
module attributes {stable_mosaic.version = 11 : i64} {
  func.func @_edge_mlp_kernel(%arg0: i32, %arg1: memref<24x16xf32, #tpu.memory_space<vmem>>, %arg2: memref<24x16xf32, #tpu.memory_space<vmem>>, %arg3: memref<24x8xf32, #tpu.memory_space<vmem>>, %arg4: memref<64x128xbf16, #tpu.memory_space<vmem>>, %arg5: memref<1x128xf32, #tpu.memory_space<vmem>>, %arg6: memref<128x128xbf16, #tpu.memory_space<vmem>>, %arg7: memref<1x128xf32, #tpu.memory_space<vmem>>, %arg8: memref<128x128xbf16, #tpu.memory_space<vmem>>, %arg9: memref<1x128xf32, #tpu.memory_space<vmem>>, %arg10: memref<1x128xf32, #tpu.memory_space<vmem>>, %arg11: memref<1x128xf32, #tpu.memory_space<vmem>>, %arg12: memref<24x128xf32, #tpu.memory_space<vmem>>, %arg13: memref<24x64xbf16, #tpu.memory_space<vmem>>) attributes {dimension_semantics = [#tpu.dimension_semantics<parallel>], iteration_bounds = array<i64: 3>, scalar_prefetch = 0 : i64, scratch_operands = 1 : i64, tpu.core_type = #tpu.core_type<tc>, window_params = [{transform_indices = @transform_0, window_bounds = array<i64: 24, 16>}, {transform_indices = @transform_1, window_bounds = array<i64: 24, 16>}, {transform_indices = @transform_2, window_bounds = array<i64: 24, 8>}, {pipeline_mode = #tpu.pipeline_mode<synchronous>, transform_indices = @transform_3, window_bounds = array<i64: 64, 128>}, {pipeline_mode = #tpu.pipeline_mode<synchronous>, transform_indices = @transform_4, window_bounds = array<i64: 1, 128>}, {pipeline_mode = #tpu.pipeline_mode<synchronous>, transform_indices = @transform_5, window_bounds = array<i64: 128, 128>}, {pipeline_mode = #tpu.pipeline_mode<synchronous>, transform_indices = @transform_6, window_bounds = array<i64: 1, 128>}, {pipeline_mode = #tpu.pipeline_mode<synchronous>, transform_indices = @transform_7, window_bounds = array<i64: 128, 128>}, {pipeline_mode = #tpu.pipeline_mode<synchronous>, transform_indices = @transform_8, window_bounds = array<i64: 1, 128>}, {pipeline_mode = #tpu.pipeline_mode<synchronous>, transform_indices = @transform_9, window_bounds = array<i64: 1, 128>}, {pipeline_mode = #tpu.pipeline_mode<synchronous>, transform_indices = @transform_10, window_bounds = array<i64: 1, 128>}, {transform_indices = @transform_11, window_bounds = array<i64: 24, 128>}]} {
    %c0_i32 = arith.constant 0 : i32
    %0 = arith.cmpi eq, %arg0, %c0_i32 : i32
    %1 = arith.extui %0 : i1 to i32
    %c0_i32_0 = arith.constant 0 : i32
    %2 = arith.cmpi ne, %1, %c0_i32_0 : i32
    scf.if %2 {
      %cst_39 = arith.constant 0.000000e+00 : bf16
      %57 = vector.broadcast %cst_39 : bf16 to vector<24x64xbf16>
      %c0_40 = arith.constant 0 : index
      %c0_41 = arith.constant 0 : index
      %58 = vector.load %arg13[%c0_40, %c0_41] : memref<24x64xbf16, #tpu.memory_space<vmem>>, vector<24x64xbf16>
      tpu.vector_store %arg13[%c0_40, %c0_41], %57 {strides = array<i32>} : memref<24x64xbf16, #tpu.memory_space<vmem>>, vector<24x64xbf16>,
    } else {
    }
    %c0 = arith.constant 0 : index
    %c0_1 = arith.constant 0 : index
    %3 = vector.load %arg1[%c0, %c0_1] : memref<24x16xf32, #tpu.memory_space<vmem>>, vector<24x16xf32>
    %4 = arith.truncf %3 : vector<24x16xf32> to vector<24x16xbf16>
    %c0_2 = arith.constant 0 : index
    %c0_3 = arith.constant 0 : index
    %5 = vector.load %arg13[%c0_2, %c0_3] : memref<24x64xbf16, #tpu.memory_space<vmem>>, vector<24x16xbf16>
    tpu.vector_store %arg13[%c0_2, %c0_3], %4 {strides = array<i32>} : memref<24x64xbf16, #tpu.memory_space<vmem>>, vector<24x16xbf16>,
    %c0_4 = arith.constant 0 : index
    %c0_5 = arith.constant 0 : index
    %6 = vector.load %arg2[%c0_4, %c0_5] : memref<24x16xf32, #tpu.memory_space<vmem>>, vector<24x16xf32>
    %7 = arith.truncf %6 : vector<24x16xf32> to vector<24x16xbf16>
    %c0_6 = arith.constant 0 : index
    %c16 = arith.constant 16 : index
    %8 = vector.load %arg13[%c0_6, %c16] : memref<24x64xbf16, #tpu.memory_space<vmem>>, vector<24x16xbf16>
    tpu.vector_store %arg13[%c0_6, %c16], %7 {strides = array<i32>} : memref<24x64xbf16, #tpu.memory_space<vmem>>, vector<24x16xbf16>,
    %c0_7 = arith.constant 0 : index
    %c0_8 = arith.constant 0 : index
    %9 = vector.load %arg3[%c0_7, %c0_8] : memref<24x8xf32, #tpu.memory_space<vmem>>, vector<24x8xf32>
    %10 = arith.truncf %9 : vector<24x8xf32> to vector<24x8xbf16>
    %c0_9 = arith.constant 0 : index
    %c32 = arith.constant 32 : index
    %11 = vector.load %arg13[%c0_9, %c32] : memref<24x64xbf16, #tpu.memory_space<vmem>>, vector<24x8xbf16>
    tpu.vector_store %arg13[%c0_9, %c32], %10 {strides = array<i32>} : memref<24x64xbf16, #tpu.memory_space<vmem>>, vector<24x8xbf16>,
    %c0_10 = arith.constant 0 : index
    %c0_11 = arith.constant 0 : index
    %12 = vector.load %arg13[%c0_10, %c0_11] : memref<24x64xbf16, #tpu.memory_space<vmem>>, vector<24x64xbf16>
    %c0_12 = arith.constant 0 : index
    %c0_13 = arith.constant 0 : index
    %13 = vector.load %arg4[%c0_12, %c0_13] : memref<64x128xbf16, #tpu.memory_space<vmem>>, vector<64x128xbf16>
    %cst = arith.constant dense<0.000000e+00> : vector<24x128xf32>
    %14 = tpu.matmul %12, %13, %cst {dimension_numbers = #tpu.dot_dimension_numbers<[1], [0], [0], [1], [0, 0, 1, 1], [], []>} : vector<24x64xbf16>, vector<64x128xbf16>, vector<24x128xf32> -> vector<24x128xf32>
    %c0_14 = arith.constant 0 : index
    %c0_15 = arith.constant 0 : index
    %15 = vector.load %arg5[%c0_14, %c0_15] : memref<1x128xf32, #tpu.memory_space<vmem>>, vector<1x128xf32>
    %16 = vector.broadcast %15 : vector<1x128xf32> to vector<24x128xf32>
    %17 = arith.addf %14, %16 : vector<24x128xf32>
    %cst_16 = arith.constant 0.000000e+00 : f32
    %18 = vector.broadcast %cst_16 : f32 to vector<24x128xf32>
    %19 = arith.maximumf %17, %18 : vector<24x128xf32>
    %20 = arith.truncf %19 : vector<24x128xf32> to vector<24x128xbf16>
    %c0_17 = arith.constant 0 : index
    %c0_18 = arith.constant 0 : index
    %21 = vector.load %arg6[%c0_17, %c0_18] : memref<128x128xbf16, #tpu.memory_space<vmem>>, vector<128x128xbf16>
    %cst_19 = arith.constant dense<0.000000e+00> : vector<24x128xf32>
    %22 = tpu.matmul %20, %21, %cst_19 {dimension_numbers = #tpu.dot_dimension_numbers<[1], [0], [0], [1], [0, 0, 1, 1], [], []>} : vector<24x128xbf16>, vector<128x128xbf16>, vector<24x128xf32> -> vector<24x128xf32>
    %c0_20 = arith.constant 0 : index
    %c0_21 = arith.constant 0 : index
    %23 = vector.load %arg7[%c0_20, %c0_21] : memref<1x128xf32, #tpu.memory_space<vmem>>, vector<1x128xf32>
    %24 = vector.broadcast %23 : vector<1x128xf32> to vector<24x128xf32>
    %25 = arith.addf %22, %24 : vector<24x128xf32>
    %cst_22 = arith.constant 0.000000e+00 : f32
    %26 = vector.broadcast %cst_22 : f32 to vector<24x128xf32>
    %27 = arith.maximumf %25, %26 : vector<24x128xf32>
    %28 = arith.truncf %27 : vector<24x128xf32> to vector<24x128xbf16>
    %c0_23 = arith.constant 0 : index
    %c0_24 = arith.constant 0 : index
    %29 = vector.load %arg8[%c0_23, %c0_24] : memref<128x128xbf16, #tpu.memory_space<vmem>>, vector<128x128xbf16>
    %cst_25 = arith.constant dense<0.000000e+00> : vector<24x128xf32>
    %30 = tpu.matmul %28, %29, %cst_25 {dimension_numbers = #tpu.dot_dimension_numbers<[1], [0], [0], [1], [0, 0, 1, 1], [], []>} : vector<24x128xbf16>, vector<128x128xbf16>, vector<24x128xf32> -> vector<24x128xf32>
    %c0_26 = arith.constant 0 : index
    %c0_27 = arith.constant 0 : index
    %31 = vector.load %arg9[%c0_26, %c0_27] : memref<1x128xf32, #tpu.memory_space<vmem>>, vector<1x128xf32>
    %32 = vector.broadcast %31 : vector<1x128xf32> to vector<24x128xf32>
    %33 = arith.addf %30, %32 : vector<24x128xf32>
    %cst_28 = arith.constant dense<0.000000e+00> : vector<24xf32>
    %34 = vector.multi_reduction <add>, %33, %cst_28 [1] : vector<24x128xf32> to vector<24xf32>
    %35 = vector.shape_cast %34 : vector<24xf32> to vector<24x1xf32>
    %cst_29 = arith.constant 1.280000e+02 : f32
    %36 = vector.broadcast %cst_29 : f32 to vector<24x1xf32>
    %37 = arith.divf %35, %36 : vector<24x1xf32>
    %38 = vector.broadcast %37 : vector<24x1xf32> to vector<24x128xf32>
    %39 = arith.subf %33, %38 : vector<24x128xf32>
    %40 = arith.mulf %39, %39 : vector<24x128xf32>
    %cst_30 = arith.constant dense<0.000000e+00> : vector<24xf32>
    %41 = vector.multi_reduction <add>, %40, %cst_30 [1] : vector<24x128xf32> to vector<24xf32>
    %42 = vector.shape_cast %41 : vector<24xf32> to vector<24x1xf32>
    %cst_31 = arith.constant 1.280000e+02 : f32
    %43 = vector.broadcast %cst_31 : f32 to vector<24x1xf32>
    %44 = arith.divf %42, %43 : vector<24x1xf32>
    %cst_32 = arith.constant 9.99999974E-6 : f32
    %45 = vector.broadcast %cst_32 : f32 to vector<24x1xf32>
    %46 = arith.addf %44, %45 : vector<24x1xf32>
    %47 = math.rsqrt %46 : vector<24x1xf32>
    %48 = vector.broadcast %47 : vector<24x1xf32> to vector<24x128xf32>
    %49 = arith.mulf %39, %48 : vector<24x128xf32>
    %c0_33 = arith.constant 0 : index
    %c0_34 = arith.constant 0 : index
    %50 = vector.load %arg10[%c0_33, %c0_34] : memref<1x128xf32, #tpu.memory_space<vmem>>, vector<1x128xf32>
    %51 = vector.broadcast %50 : vector<1x128xf32> to vector<24x128xf32>
    %52 = arith.mulf %49, %51 : vector<24x128xf32>
    %c0_35 = arith.constant 0 : index
    %c0_36 = arith.constant 0 : index
    %53 = vector.load %arg11[%c0_35, %c0_36] : memref<1x128xf32, #tpu.memory_space<vmem>>, vector<1x128xf32>
    %54 = vector.broadcast %53 : vector<1x128xf32> to vector<24x128xf32>
    %55 = arith.addf %52, %54 : vector<24x128xf32>
    %c0_37 = arith.constant 0 : index
    %c0_38 = arith.constant 0 : index
    %56 = vector.load %arg12[%c0_37, %c0_38] : memref<24x128xf32, #tpu.memory_space<vmem>>, vector<24x128xf32>
    tpu.vector_store %arg12[%c0_37, %c0_38], %55 {strides = array<i32>} : memref<24x128xf32, #tpu.memory_space<vmem>>, vector<24x128xf32>,
    return
  }
  func.func @transform_0(%arg0: i32) -> (i32, i32) {
    %c0_i32 = arith.constant 0 : i32
    %c0_i32_0 = arith.constant 0 : i32
    return %arg0, %c0_i32 : i32, i32
  }
  func.func @transform_1(%arg0: i32) -> (i32, i32) {
    %c0_i32 = arith.constant 0 : i32
    %c0_i32_0 = arith.constant 0 : i32
    return %arg0, %c0_i32 : i32, i32
  }
  func.func @transform_2(%arg0: i32) -> (i32, i32) {
    %c0_i32 = arith.constant 0 : i32
    %c0_i32_0 = arith.constant 0 : i32
    return %arg0, %c0_i32 : i32, i32
  }
  func.func @transform_3(%arg0: i32) -> (i32, i32) {
    %c0_i32 = arith.constant 0 : i32
    %c0_i32_0 = arith.constant 0 : i32
    %c0_i32_1 = arith.constant 0 : i32
    return %c0_i32, %c0_i32_0 : i32, i32
  }
  func.func @transform_4(%arg0: i32) -> (i32, i32) {
    %c0_i32 = arith.constant 0 : i32
    %c0_i32_0 = arith.constant 0 : i32
    %c0_i32_1 = arith.constant 0 : i32
    return %c0_i32, %c0_i32_0 : i32, i32
  }
  func.func @transform_5(%arg0: i32) -> (i32, i32) {
    %c0_i32 = arith.constant 0 : i32
    %c0_i32_0 = arith.constant 0 : i32
    %c0_i32_1 = arith.constant 0 : i32
    return %c0_i32, %c0_i32_0 : i32, i32
  }
  func.func @transform_6(%arg0: i32) -> (i32, i32) {
    %c0_i32 = arith.constant 0 : i32
    %c0_i32_0 = arith.constant 0 : i32
    %c0_i32_1 = arith.constant 0 : i32
    return %c0_i32, %c0_i32_0 : i32, i32
  }
  func.func @transform_7(%arg0: i32) -> (i32, i32) {
    %c0_i32 = arith.constant 0 : i32
    %c0_i32_0 = arith.constant 0 : i32
    %c0_i32_1 = arith.constant 0 : i32
    return %c0_i32, %c0_i32_0 : i32, i32
  }
  func.func @transform_8(%arg0: i32) -> (i32, i32) {
    %c0_i32 = arith.constant 0 : i32
    %c0_i32_0 = arith.constant 0 : i32
    %c0_i32_1 = arith.constant 0 : i32
    return %c0_i32, %c0_i32_0 : i32, i32
  }
  func.func @transform_9(%arg0: i32) -> (i32, i32) {
    %c0_i32 = arith.constant 0 : i32
    %c0_i32_0 = arith.constant 0 : i32
    %c0_i32_1 = arith.constant 0 : i32
    return %c0_i32, %c0_i32_0 : i32, i32
  }
  func.func @transform_10(%arg0: i32) -> (i32, i32) {
    %c0_i32 = arith.constant 0 : i32
    %c0_i32_0 = arith.constant 0 : i32
    %c0_i32_1 = arith.constant 0 : i32
    return %c0_i32, %c0_i32_0 : i32, i32
  }
  func.func @transform_11(%arg0: i32) -> (i32, i32) {
    %c0_i32 = arith.constant 0 : i32
    %c0_i32_0 = arith.constant 0 : i32
    return %arg0, %c0_i32 : i32, i32
  }
}

</mosaic_0001>

<bundles_post_ra>
// kernel: edge_model_forward.1
= control target key start
LH: loop header
LB: loop body
LE: loop exit
PB: predicated region body
PF: predicated region fallthrough
CT: control target
= control target key end

     0   :  { %16 = vsyncpa [#allocation4], 0  ;;  %s1441_s0 = inlined_call_operand.vmem [shape: f32[70,16], index: 0, kind: input, shape index: {}]   ;;  %s1442_s1 = inlined_call_operand.vmem [shape: f32[70,16], index: 1, kind: input, shape index: {}]   ;;  %s1443_s2 = inlined_call_operand.vmem [shape: f32[70,8], index: 2, kind: input, shape index: {}]   ;;  %s1444_s3 = inlined_call_operand.vmem [shape: bf16[64,128], index: 3, kind: input, shape index: {}]   ;;  %s1445_s4 = inlined_call_operand.vmem [shape: f32[1,128], index: 4, kind: input, shape index: {}]   ;;  %s1446_s5 = inlined_call_operand.vmem [shape: bf16[128,128], index: 5, kind: input, shape index: {}]   ;;  %s1447_s6 = inlined_call_operand.vmem [shape: f32[1,128], index: 6, kind: input, shape index: {}]   ;;  %s1448_s7 = inlined_call_operand.vmem [shape: bf16[128,128], index: 7, kind: input, shape index: {}]   ;;  %s1449_s8 = inlined_call_operand.vmem [shape: f32[1,128], index: 8, kind: input, shape index: {}]   ;;  %s1450_s9 = inlined_call_operand.vmem [shape: f32[1,128], index: 9, kind: input, shape index: {}]   ;;  %s1451_s10 = inlined_call_operand.vmem [shape: f32[1,128], index: 10, kind: input, shape index: {}]   ;;  %s1452_s11 = inlined_call_operand.hbm [shape: f32[70,128], index: 11, kind: output, shape index: {}]  }
   0x1   :  { %18 = vsyncpa [#allocation4 + $0x1], 0  ;;  %s1251_s17 = smov 0   ;;  %s1253_s18 = smov 0  }
   0x2   :  { %s1255_s19 = smov 0   ;;  %s1257_s20 = smov 0  }
   0x3 LB: > { %1457 = sst [smem:[#allocation6_spill]] %s1179_s19  ;;  %s1272_s21 = sadd.s32 4294967295, %s1183_s20   ;;  %s1183_s20 = sphi %s1257_s20, %s1464_s20   ;;  %s1179_s19 = sphi %s1255_s19, %s1466_s19   ;;  %s1175_s18 = sphi %s1253_s18, %s1468_s18   ;;  %s1171_s17 = sphi %s1251_s17, %s1467_s17  }
   0x4   : > { %s935_s22 = sadd.s32 4294967294, %s1183_s20   ;;  %s1276_s23 = sadd.s32 1, %s1183_s20  }
   0x5   : > { %1458 = sst [smem:[#allocation7_spill]] %s1276_s23  ;;  %s277_s24 = sadd.s32 1, %s1179_s19 }
   0x6   : > { %s274_s25 = ssub.s32 %s1183_s20, %s1276_s23  ;;  %p287_p0 = scmp.ne.s32.totalorder %s1179_s19, %s1175_s18 }
   0x7   : > { %p275_p1 = scmp.eq.s32.totalorder %s274_s25, 0  ;;  %p288_p2 = scmp.eq.s32.totalorder %s1272_s21, 2 }
   0x8   : > { %p293_p3 = scmp.ne.s32.totalorder %s1175_s18, %s1171_s17  ;;  %p294_p4 = scmp.eq.s32.totalorder %s935_s22, 2 }
   0x9   : > { %s1287_s26 = scalar_select %p275_p1, %s1179_s19, %s277_s24  }
   0xa   : > { %p1289_p5 = por %p288_p2, %p287_p0  ;;  %p1293_p6 = por %p294_p4, %p293_p3 }
   0xb   : > { %1459 = sst [smem:[#allocation8_spill]] %s1287_s26  ;;  %p938_p7 = scmp.ge.s32.totalorder %s1183_s20, 1 }
   0xc   : > { %s1461_s28 = scalar_select %p1293_p6, 1, 0 }
   0xd   : > { %p363_p8 = scmp.lt.s32.totalorder %s1183_s20, 4 }
   0xe   : > { %1462 = sst [smem:[#allocation9_spill]] %s1461_s28 }
   0xf   : > { %p364_p9 = pnand %p938_p7, %p363_p8 }
  0x10   : > { %s410_s29 = sand.u32 (!%p364_p9), 1, %s1175_s18   ;;  %s413_s30 = smul.u32 (!%p364_p9), 3, %s1272_s21 }
  0x11   : > { %367 = sbr.rel (%p364_p9) target bundleno = 866 (0x362), region = 64  ;;  %p942_p11 = scmp.ne.s32.totalorder (!%p364_p9), %s1272_s21, 0 }
  0x12   : > { %s1062_s12 = smul.u32 (!%p364_p9), 24, %s410_s29  ;;  %p414_p10 = scmp.lt.s32.totalorder (!%p364_p9), %s413_s30, 8 }
  0x14   : > { %s1314_s28 = scalar_lea.vmem (!%p364_p9), [#allocation3], %s1062_s12 }
  0x16   : > { %s1470_s30 = smov (!%p414_p10, %s413_s30), 8  ;;  %436 = sbr.rel (%p942_p11) target bundleno = 31 (0x1f), region = 68 }
  0x17   : > { %s939_s13 = sshll.u32 %s1470_s30, 3 }
  0x18   : > { %s1306_s16 = scalar_lea.vmem %s1441_s0, %s939_s13  ;;  %s423_s25 = scalar_lea.vmem %s1442_s1, %s939_s13 }
  0x19   : > { %s429_s23 = scalar_lea.vmem %s1443_s2, %s939_s13 }
  0x1b   : > { %vm437_vm0 = vcmask 519168   ;;  %v1185_v0 = vmov 0  }
  0x1c   : > { %438 = vst.msk [vmem:[#allocation2] sm:$0xf] %vm437_vm0, %v1185_v0 }
  0x1d   : > { %439 = vst.msk [vmem:[#allocation2 + $0x4] sm:$0xf] %vm437_vm0, %v1185_v0 }
  0x1e   : > { %440 = vst.msk [vmem:[#allocation2 + $0x8] sm:$0xf] %vm437_vm0, %v1185_v0 }
  0x1f PF: > { %v451_v1 = vld [vmem:[%s423_s25] sm:$0xff]  ;;  %v453_v5 = vld [vmem:[%s423_s25 + $0x10] sm:$0xff]  ;;  %s1186_s19 = smov 16   ;;  %s1187_s26 = smov 32   ;;  %v452_v7 = vld [vmem:[%s423_s25 + $0x8] sm:$0xff]  ;;  %vm447_vm1 = vcmask 125952  }
  0x20   : > { %v473_v2 = vld [vmem:[%s429_s23] sm:$0xff]  ;;  %v454_v3 = vpack.c.bf16 %v451_v1, %v451_v1  ;;  %v456_v6 = vpack.c.bf16 %v453_v5, %v453_v5  ;;  %v474_v8 = vld [vmem:[%s429_s23 + $0x8] sm:$0xff]  ;;  %v475_v9 = vld [vmem:[%s429_s23 + $0x10] sm:$0xff]  ;;  %v455_v10 = vpack.c.bf16 %v452_v7, %v452_v7  ;;  %vm469_vm2 = vcmask 257152   ;;  %s1053_s23 = smul.u32 24, %s1272_s21  ;;  %s846_s22 = sshll.u32 %s1314_s28, 4  ;;  %s847_s22 = int_to_ptr.vmem [resolvable:$true] %s846_s22 }
  0x21   : > { %v476_v4 = vpack.c.bf16 %v473_v2, %v473_v2  ;;  %v477_v11 = vpack.c.bf16 %v474_v8, %v474_v8  ;;  %v478_v12 = vpack.c.bf16 %v475_v9, %v475_v9  ;;  %v441_v13 = vld [vmem:[%s1306_s16] sm:$0xff]  ;;  %v1036_v15 = vld [vmem:[%s1444_s3 + $0x18] sm:$0xff]  ;;  %v442_v16 = vld [vmem:[%s1306_s16 + $0x8] sm:$0xff]  ;;  %vm491_vm3 = vcmask 322816   ;;  %s834_s21 = scalar_lea.sflag [#allocation4], %s410_s29  ;;  %s1141_s30 = scalar_lea.hbm %s1452_s11, 72 }
  0x22   : > { %460 = vrot.lane.b32.xlu0 %v454_v3, %s1186_s19  ;;  %464 = vrot.lane.b32.xlu2 %v456_v6, %s1186_s19  ;;  %v444_v14 = vpack.c.bf16 %v441_v13, %v441_v13  ;;  %v445_v17 = vpack.c.bf16 %v442_v16, %v442_v16  ;;  %v1035_v18 = vld [vmem:[%s1444_s3 + $0x10] sm:$0xff]  ;;  %v1034_v19 = vld [vmem:[%s1444_s3 + $0x8] sm:$0xff]  ;;  %vm542_vm4 = vcmask 523264   ;;  %s845_s15 = scalar_lea.hbm %s1452_s11, %s1053_s23 }
  0x23   : > { %482 = vrot.lane.b32.xlu1 %v476_v4, %s1187_s26  ;;  %553 = vmatpush.bf16.msra.mxu0 %v1036_v15  ;;  %v443_v21 = vld [vmem:[%s1306_s16 + $0x10] sm:$0xff]  ;;  %v1033_v23 = vld [vmem:[%s1444_s3] sm:$0xff]  ;;  %v1044_v27 = vld [vmem:[%s1446_s5 + $0x38] sm:$0xff]  ;;  %s848_s24 = sshll.u32 %s845_s15, 4  ;;  %s849_s24 = int_to_ptr.hbm [resolvable:$true] %s848_s24 }
  0x24   : > { %448 = vst.msk [vmem:[#allocation2] sm:$0xf] %vm447_vm1, %v444_v14  ;;  %v446_v22 = vpack.c.bf16 %v443_v21, %v443_v21  ;;  %640 = vmatpush.bf16.msra.mxu1 %v1044_v27  ;;  %v1043_v28 = vld [vmem:[%s1446_s5 + $0x30] sm:$0xff]  ;;  %1054 = vmatpush.bf16.msra.mxu3 %v1044_v27  ;;  %v1042_v31 = vld [vmem:[%s1446_s5 + $0x28] sm:$0xff]  ;;  %v1041_v32 = vld [vmem:[%s1446_s5 + $0x20] sm:$0xff]  ;;  %s1135_s16 = sshra.s32 %s849_s24, 4  ;;  %s1136_s16 = int_to_ptr.hbm [resolvable:$true] %s1135_s16 }
  0x25   : > { %449 = vst.msk [vmem:[#allocation2 + $0x4] sm:$0xf] %vm447_vm1, %v445_v17  ;;  %v1040_v37 = vld [vmem:[%s1446_s5 + $0x18] sm:$0xff]  ;;  %v1039_v38 = vld [vmem:[%s1446_s5 + $0x10] sm:$0xff]  ;;  %v1038_v39 = vld [vmem:[%s1446_s5 + $0x8] sm:$0xff]  ;;  %s1137_s25 = scalar_lea.hbm %s1136_s16, 24  ;;  %p1142_p1 = scmp.lt.s32.totalorder %s1136_s16, %s1452_s11 }
  0x26   : > { %450 = vst.msk [vmem:[#allocation2 + $0x8] sm:$0xf] %vm447_vm1, %v446_v22  ;;  %v1037_v40 = vld [vmem:[%s1446_s5] sm:$0xff]  ;;  %v1052_v41 = vld [vmem:[%s1448_s7 + $0x38] sm:$0xff]  ;;  %v1051_v42 = vld [vmem:[%s1448_s7 + $0x30] sm:$0xff]  ;;  %p1138_p12 = scmp.ne.s32.totalorder %s1136_s16, %s1137_s25  ;;  %p1143_p2 = scmp.lt.s32.totalorder %s1141_s30, %s1137_s25 }
  0x27   : > { %554 = vmatpush.bf16.msra.mxu0 %v1035_v18  ;;  %731 = vmatpush.bf16.msra.mxu2 %v1052_v41  ;;  %v1050_v43 = vld [vmem:[%s1448_s7 + $0x28] sm:$0xff]  ;;  %v1049_v45 = vld [vmem:[%s1448_s7 + $0x20] sm:$0xff]  ;;  %v1048_v58 = vld [vmem:[%s1448_s7 + $0x18] sm:$0xff] }
  0x28   : > { %641 = vmatpush.bf16.msra.mxu1 %v1043_v28  ;;  %1055 = vmatpush.bf16.msra.mxu3 %v1043_v28  ;;  %v1108_v46 = vld [vmem:[%s1445_s4] ss:$0 sm:$0xff]  ;;  %v1047_v59 = vld [vmem:[%s1448_s7 + $0x10] sm:$0xff]  ;;  %v1046_v60 = vld [vmem:[%s1448_s7 + $0x8] sm:$0xff]  ;;  %p1139_p13 = pnand %p1138_p12, %p1289_p5  ;;  %p1144_p3 = por %p1143_p2, %p1142_p1 }
  0x29   : > { %v1045_v61 = vld [vmem:[%s1448_s7] sm:$0xff] }
  0x2a   : > { %462 = vrot.lane.b32.xlu0 %v455_v10, %s1186_s19  ;;  %486 = vrot.lane.b32.xlu2 %v478_v12, %s1187_s26  ;;  %v1109_v63 = vld [vmem:[%s1447_s6] ss:$0 sm:$0xff]  ;;  %p1140_p0 = pneg %p1139_p13 }
  0x2b   : > { %484 = vrot.lane.b32.xlu1 %v477_v11, %s1187_s26  ;;  %555 = vmatpush.bf16.msra.mxu0 %v1034_v19  ;;  %v1110_v11 = vld [vmem:[%s1449_s8] ss:$0 sm:$0xff]  ;;  %v1188_v19 = vmov 128.0  }
  0x2c   : > { %642 = vmatpush.bf16.msra.mxu1 %v1042_v31  ;;  %1056 = vmatpush.bf16.msra.mxu3 %v1042_v31  ;;  %1113 = vrcp.f32 %v1188_v19  ;;  %p1145_p4 = pnand %p1144_p3, %p1140_p0 }
  0x2d   : > { %732 = vmatpush.bf16.msra.mxu2 %v1051_v42 }
  0x2f   : > { %556 = vmatpush.bf16.msra.mxu0 %v1033_v23 }
  0x30   : > { %643 = vmatpush.bf16.msra.mxu1 %v1041_v32  ;;  %1057 = vmatpush.bf16.msra.mxu3 %v1041_v32 }
  0x31   : > { %733 = vmatpush.bf16.msra.mxu2 %v1050_v43 }
  0x34   : > { %644 = vmatpush.bf16.msra.mxu1 %v1040_v37  ;;  %1058 = vmatpush.bf16.msra.mxu3 %v1040_v37 }
  0x35   : > { %734 = vmatpush.bf16.msra.mxu2 %v1049_v45 }
  0x38   : > { %645 = vmatpush.bf16.msra.mxu1 %v1039_v38  ;;  %1059 = vmatpush.bf16.msra.mxu3 %v1039_v38 }
  0x39   : > { %735 = vmatpush.bf16.msra.mxu2 %v1048_v58  ;;  %v1112_v58 = vld [vmem:[%s1451_s10] ss:$0 sm:$0xff] }
  0x3c   : > { %646 = vmatpush.bf16.msra.mxu1 %v1038_v39  ;;  %1060 = vmatpush.bf16.msra.mxu3 %v1038_v39 }
  0x3d   : > { %736 = vmatpush.bf16.msra.mxu2 %v1047_v59 }
  0x40   : > { %647 = vmatpush.bf16.msra.mxu1 %v1037_v40  ;;  %1061 = vmatpush.bf16.msra.mxu3 %v1037_v40 }
  0x41   : > { %737 = vmatpush.bf16.msra.mxu2 %v1046_v60 }
  0x45   : > { %738 = vmatpush.bf16.msra.mxu2 %v1045_v61 }
  0x7c   : > { %v465_v20 = vpop.permute.xlu2 %464 }
  0x7d   : > { %472 = vst.msk [vmem:[#allocation2 + $0x8] sm:$0xf] %vm469_vm2, %v465_v20  ;;  %v1114_v20 = vpop.eup %1113 }
  0x7e   : > { %v756_v21 = vmul.f32 128.0, %v1114_v20  ;;  %vm760_vm5 = vweird.f32 %v1114_v20 }
  0x80   : > { %v757_v22 = vsub.f32 1.0, %v756_v21 }
  0x82   : > { %v758_v23 = vmul.f32 %v1114_v20, %v757_v22 }
  0x84   : > { %v487_v24 = vpop.permute.xlu2 %486 }
  0x85   : > { %494 = vst.msk [vmem:[#allocation2 + $0x8] sm:$0xf] %vm491_vm3, %v487_v24  ;;  %v759_v24 = vadd.f32 %v1114_v20, %v758_v23 }
  0x8c   : > { %v497_v34 = vld [vmem:[#allocation2 + $0x8] sm:$0xf] }
  0x8d   : > { %v515_v35 = vunpack.c.l.b16 %v497_v34 }
  0x8f   : > { %v517_v36 = vpack.c.b16 %v515_v35, %v515_v35 }
  0x94   : > { %v461_v25 = vpop.permute.xlu0 %460 }
  0x95   : > { %v483_v26 = vpop.permute.xlu1 %482  ;;  %470 = vst.msk [vmem:[#allocation2] sm:$0xf] %vm469_vm2, %v461_v25  ;;  %v761_v25 = vsel %vm760_vm5, %v1114_v20, %v759_v24 }
  0x96   : > { %492 = vst.msk [vmem:[#allocation2] sm:$0xf] %vm491_vm3, %v483_v26 }
  0x9c   : > { %v463_v29 = vpop.permute.xlu0 %462 }
  0x9d   : > { %v485_v30 = vpop.permute.xlu1 %484  ;;  %471 = vst.msk [vmem:[#allocation2 + $0x4] sm:$0xf] %vm469_vm2, %v463_v29 }
  0x9e   : > { %493 = vst.msk [vmem:[#allocation2 + $0x4] sm:$0xf] %vm491_vm3, %v485_v30 }
  0xa5   : > { %v1032_v33 = vld [vmem:[#allocation2] sm:$0xff] }
  0xa6   : > { %963 = vmatmul.msk.bf16.vlgmr.msra.gmra.mxu0 %vm542_vm4, %v1032_v33 }
  0xb6   : > { %964 = vmatmul.msk.bf16.gmra.mxu0 %vm542_vm4, %v517_v36 }
 0x123   : > { %v558_v44 = vpop.f32.mrf.mxu0 }
 0x124   : > { %v559_v47 = vadd.f32 %v1108_v46, %v558_v44 }
 0x126   : > { %v567_v50 = vmax.f32 %v559_v47, 0.0 }
 0x12b   : > { %v560_v48 = vpop.f32.mrf.mxu0 }
 0x12c   : > { %v561_v49 = vadd.f32 %v1108_v46, %v560_v48 }
 0x12e   : > { %v568_v51 = vmax.f32 %v561_v49, 0.0 }
 0x130   : > { %v570_v52 = vpack.c.bf16 %v568_v51, %v567_v50 }
 0x132   : > { %648 = vmatmul.bf16.vlgmr.msra.gmra.mxu1 %v570_v52 }
 0x133   : > { %v563_v53 = vpop.f32.mrf.mxu0 }
 0x134   : > { %v564_v54 = vadd.f32 %v1108_v46, %v563_v53 }
 0x136   : > { %v569_v55 = vmax.f32 %v564_v54, 0.0 }
 0x138   : > { %v571_v56 = vpack.c.bf16 %v569_v55, %v569_v55  ;;  %v1111_v55 = vld [vmem:[%s1450_s9] ss:$0 sm:$0xff] }
 0x13a   : > { %653 = vmatmul.bf16.vlgmr.msra.gmra.mxu3 %v571_v56 }
 0x13b   : > { %v565_v57 = vpop.f32.mrf.mxu0 }
 0x1af   : > { %v649_v62 = vpop.f32.mrf.mxu1 }
 0x1b0   : > { %v650_v0 = vadd.f32 %v1109_v63, %v649_v62 }
 0x1b2   : > { %v658_v3 = vmax.f32 %v650_v0, 0.0 }
 0x1b7   : > { %v651_v1 = vpop.f32.mrf.mxu1 }
 0x1b8   : > { %v652_v2 = vadd.f32 %v1109_v63, %v651_v1 }
 0x1ba   : > { %v659_v4 = vmax.f32 %v652_v2, 0.0 }
 0x1bc   : > { %v661_v5 = vpack.c.bf16 %v659_v4, %v658_v3 }
 0x1bd   : > { %v654_v6 = vpop.f32.mrf.mxu3 }
 0x1be   : > { %739 = vmatmul.bf16.vlgmr.msra.gmra.mxu2 %v661_v5  ;;  %v655_v7 = vadd.f32 %v1109_v63, %v654_v6 }
 0x1c0   : > { %v660_v9 = vmax.f32 %v655_v7, 0.0 }
 0x1c2   : > { %v662_v10 = vpack.c.bf16 %v660_v9, %v660_v9 }
 0x1c5   : > { %v656_v8 = vpop.f32.mrf.mxu3 }
 0x1ce   : > { %744 = vmatmul.bf16.gmra.mxu2 %v662_v10 }
 0x241   : > { %v740_v12 = vpop.f32.mrf.mxu2 }
 0x242   : > { %v741_v13 = vadd.f32 %v1110_v11, %v740_v12 }
 0x244   : > { %749 = vadd.xlane.f32.xlu0 %v741_v13 }
 0x249   : > { %v742_v14 = vpop.f32.mrf.mxu2 }
 0x24a   : > { %v743_v15 = vadd.f32 %v1110_v11, %v742_v14 }
 0x24c   : > { %751 = vadd.xlane.f32.xlu1 %v743_v15 }
 0x251   : > { %v745_v16 = vpop.f32.mrf.mxu2 }
 0x252   : > { %v746_v17 = vadd.f32 %v1110_v11, %v745_v16 }
 0x254   : > { %753 = vadd.xlane.f32.xlu2 %v746_v17 }
 0x259   : > { %v747_v18 = vpop.f32.mrf.mxu2 }
 0x2b7   : > { %v750_v26 = vpop.xlane.xlu0 %749 }
 0x2b8   : > { %v762_v27 = vmul.f32 %v761_v25, %v750_v26 }
 0x2ba   : > { %v765_v28 = vsub.f32 %v741_v13, %v762_v27 }
 0x2bc   : > { %v768_v29 = vmul.f32 %v765_v28, %v765_v28 }
 0x2be   : > { %771 = vadd.xlane.f32.xlu2 %v768_v29 }
 0x2bf   : > { %v752_v30 = vpop.xlane.xlu1 %751 }
 0x2c0   : > { %v763_v31 = vmul.f32 %v761_v25, %v752_v30 }
 0x2c2   : > { %v766_v32 = vsub.f32 %v743_v15, %v763_v31 }
 0x2c4   : > { %v769_v33 = vmul.f32 %v766_v32, %v766_v32 }
 0x2c6   : > { %773 = vadd.xlane.f32.xlu0 %v769_v33 }
 0x2c7   : > { %v754_v34 = vpop.xlane.xlu2 %753 }
 0x2c8   : > { %v764_v35 = vmul.f32 %v761_v25, %v754_v34 }
 0x2ca   : > { %v767_v36 = vsub.f32 %v746_v17, %v764_v35 }
 0x2cc   : > { %v770_v37 = vmul.f32 %v767_v36, %v767_v36 }
 0x2ce   : > { %775 = vadd.xlane.f32.xlu1 %v770_v37 }
 0x331   : > { %v772_v38 = vpop.xlane.xlu2 %771 }
 0x332   : > { %v777_v39 = vmul.f32 %v772_v38, %v761_v25 }
 0x334   : > { %v780_v40 = vadd.f32 1e-05, %v777_v39 }
 0x336   : > { %1115 = vrsqrt.f32 %v780_v40  ;;  %vm789_vm7 = vweird.f32 %v780_v40 }
 0x339   : > { %v774_v41 = vpop.xlane.xlu0 %773 }
 0x33a   : > { %v778_v42 = vmul.f32 %v774_v41, %v761_v25 }
 0x33c   : > { %v1116_v43 = vpop.eup %1115  ;;  %v781_v44 = vadd.f32 1e-05, %v778_v42 }
 0x33d   : > { %v784_v45 = vmul.f32 %v1116_v43, %v780_v40  ;;  %vm790_vm6 = vweird.f32 %v1116_v43 }
 0x33e   : > { %1117 = vrsqrt.f32 %v781_v44  ;;  %vm791_vm8 = vmor %vm789_vm7, %vm790_vm6  ;;  %vm799_vm10 = vweird.f32 %v781_v44 }
 0x33f   : > { %v785_v46 = vmul.f32 %v1116_v43, %v784_v45 }
 0x341   : > { %v786_v47 = vmul.f32 0.5, %v785_v46  ;;  %v776_v48 = vpop.xlane.xlu1 %775 }
 0x342   : > { %v779_v49 = vmul.f32 %v776_v48, %v761_v25 }
 0x343   : > { %v787_v50 = vsub.f32 1.5, %v786_v47 }
 0x344   : > { %v1118_v51 = vpop.eup %1117  ;;  %v782_v52 = vadd.f32 1e-05, %v779_v49 }
 0x345   : > { %v788_v53 = vmul.f32 %v1116_v43, %v787_v50  ;;  %v794_v54 = vmul.f32 %v1118_v51, %v781_v44  ;;  %vm800_vm9 = vweird.f32 %v1118_v51 }
 0x346   : > { %1119 = vrsqrt.f32 %v782_v52  ;;  %vm801_vm11 = vmor %vm799_vm10, %vm800_vm9  ;;  %vm809_vm13 = vweird.f32 %v782_v52 }
 0x347   : > { %v792_v56 = vsel %vm791_vm8, %v1116_v43, %v788_v53  ;;  %v795_v57 = vmul.f32 %v1118_v51, %v794_v54 }
 0x348   : > { %v813_v59 = vmul.f32 %v792_v56, %v765_v28 }
 0x349   : > { %v796_v60 = vmul.f32 0.5, %v795_v57 }
 0x34a   : > { %v820_v61 = vmul.f32 %v1111_v55, %v813_v59 }
 0x34b   : > { %v797_v62 = vsub.f32 1.5, %v796_v60 }
 0x34c   : > { %v1120_v63 = vpop.eup %1119  ;;  %v827_v0 = vadd.f32 %v1112_v58, %v820_v61 }
 0x34d   : > { %v798_v1 = vmul.f32 %v1118_v51, %v797_v62  ;;  %v804_v2 = vmul.f32 %v1120_v63, %v782_v52  ;;  %vm810_vm12 = vweird.f32 %v1120_v63 }
 0x34e   : > { %830 = vst [vmem:[%s1314_s28] sm:$0xff] %v827_v0  ;;  %vm811_vm14 = vmor %vm809_vm13, %vm810_vm12 }
 0x34f   : > { %v802_v3 = vsel %vm801_vm11, %v1118_v51, %v798_v1  ;;  %v805_v4 = vmul.f32 %v1120_v63, %v804_v2 }
 0x350   : > { %v814_v5 = vmul.f32 %v802_v3, %v766_v32 }
 0x351   : > { %v806_v6 = vmul.f32 0.5, %v805_v4 }
 0x352   : > { %v821_v7 = vmul.f32 %v1111_v55, %v814_v5 }
 0x353   : > { %v807_v8 = vsub.f32 1.5, %v806_v6 }
 0x354   : > { %v828_v9 = vadd.f32 %v1112_v58, %v821_v7 }
 0x355   : > { %v808_v10 = vmul.f32 %v1120_v63, %v807_v8 }
 0x356   : > { %831 = vst [vmem:[%s1314_s28 + $0x8] sm:$0xff] %v828_v9 }
 0x357   : > { %v812_v11 = vsel %vm811_vm14, %v1120_v63, %v808_v10 }
 0x358   : > { %v815_v12 = vmul.f32 %v812_v11, %v767_v36 }
 0x35a   : > { %v822_v13 = vmul.f32 %v1111_v55, %v815_v12 }
 0x35c   : > { %v829_v14 = vadd.f32 %v1112_v58, %v822_v13 }
 0x35e   : > { %832 = vst [vmem:[%s1314_s28 + $0x10] sm:$0xff] %v829_v14 }
 0x35f   : > { %1148 = shalt.err (!%p1145_p4)
}
 0x360   : > { %s1189_s28 = smov 128   ;;  %s1190_s29 = smov 8  }
 0x361   : > { %1063 = dma.vmem_to_hbm [thread:$0]  (%p1289_p5), %s847_s22, 384, %s849_s24, %s834_s21, %s1189_s28, %s1189_s28, %s1190_s29  }
 0x362 PF: > { %p1069_p7 = scmp.ge.s32.totalorder %s1183_s20, 2  ;;  %s863_s14 = sand.u32 1, %s1171_s17  }
 0x363   : > { %s864_s15 = scalar_lea.sflag [#allocation4], %s863_s14 }
 0x364   : > { %p1066_p8 = pnand %p1069_p7, %p1293_p6 }
 0x366   : > { %p1067_p9 = pneg %p1066_p8 }
 0x368   : > { %1166 = dma.done.wait (%p1067_p9), %s864_s15, 384  }
 0x369   : > { %1168 = vsyncadd (%p1067_p9), %s864_s15, 4294966912  ;;  %s1464_s20 = sld [smem:[#allocation7_spill]]  ;;  %s1467_s17 = smov %s1175_s18 }
 0x36a   : > { %s1465_s16 = sld [smem:[#allocation6_spill]] }
 0x36b   : > { %s1466_s19 = sld [smem:[#allocation8_spill]] }
 0x36f   : > { %p21_p10 = scmp.ge.s32.totalorder %s1464_s20, 5  }
 0x370   : > { %s1468_s18 = smov %s1465_s16 }
 0x371   :  { %23 = sbr.rel (!%p21_p10) target bundleno = 3 (0x3), region = 109 }
 0x376   :  { %870 = vsyncpa [#allocation4], 1 }
 0x377   :  { %872 = vsyncpa [#allocation4 + $0x1], 1 }

</bundles_post_ra>
